<compile_context>
chip_gen: v7x
topology: tpu7x:2x2x1
jax: 0.10.0
libtpu: 0.0.40
codegen_flags: <defaults>
</compile_context>

<pallas_src>
import numpy as np
import jax
import jax.numpy as jnp
from jax.experimental import pallas as pl
from jax.experimental.pallas import tpu as pltpu

TEMPERATURE = 0.1
NUM_PROGRAMS = 4          # program_map has 4 entries
IMG = 28
HIDDEN = 32               # synthetic digit_net hidden width
NUM_SUMS = 19             # possible sums of two digits: 0..18
OUT_PAD = 128             # lane-padded output width (sliced to 19 in wrapper)


def _softmax_last(x):
    m = jnp.max(x, axis=-1, keepdims=True)
    e = jnp.exp(x - m)
    return e * pl.reciprocal(jnp.sum(e, axis=-1, keepdims=True), approx=False)


def progadd_kernel(x_ref, w1_ref, b1_ref, w2_ref, b2_ref,
                   onehot_ref, wp_ref, bp_ref, wr_ref, br_ref,
                   masks_ref, out_ref):
    TB = out_ref.shape[0]

    # --- digit_net (synthetic MLP 784 -> 32 -> 10) on the MXU --------------
    x = x_ref[...]                                                    # (TB*4, 784)
    h1 = jnp.maximum(
        jnp.dot(x, w1_ref[...], preferred_element_type=jnp.float32) + b1_ref[...],
        0.0)                                                          # (TB*4, 32)
    # 1/TEMPERATURE is pre-folded into w2/b2, so these are already the scaled
    # logits; softmax directly.
    logits = jnp.dot(h1, w2_ref[...],
                     preferred_element_type=jnp.float32) + b2_ref[...]  # (TB*4, 10)
    digit_probs = _softmax_last(logits)                               # (TB*4, 10)
    dp3 = digit_probs.reshape(TB, 4, 10)                              # (TB, 4, 10)

    # --- pointer encoder + fused read heads ---------------------------------
    h = jnp.dot(onehot_ref[...], wp_ref[...],
                preferred_element_type=jnp.float32) + bp_ref[...]     # (TB, 16)
    rh = jnp.dot(h, wr_ref[...],
                 preferred_element_type=jnp.float32) + br_ref[...]    # (TB, 8)
    ptr1 = _softmax_last(rh[:, 0:4])                                  # (TB, 4)
    ptr2 = _softmax_last(rh[:, 4:8])                                  # (TB, 4)

    # --- bmm(ptr, digit_probs) as broadcast-multiply + reduce ---------------
    dist1 = jnp.sum(ptr1[:, :, None] * dp3, axis=1)                   # (TB, 10)
    dist2 = jnp.sum(ptr2[:, :, None] * dp3, axis=1)                   # (TB, 10)

    # Plain outer product; the 0.5*(A + A^T) symmetrization of the original
    # module is a no-op under the symmetric anti-diagonal masks.
    outer = dist1[:, :, None] * dist2[:, None, :]                     # (TB, 10, 10)

    # --- anti-diagonal masked sums as one MXU matmul -------------------------
    # masks_ref is (100, OUT_PAD): column k (k < 19) holds the flattened
    # anti-diagonal i + j == k mask; columns >= 19 are zero padding.
    sum_dist = jnp.dot(outer.reshape(TB, 100), masks_ref[...],
                       preferred_element_type=jnp.float32)            # (TB, OUT_PAD)
    out_ref[...] = jnp.log(sum_dist + 1e-10)


def build_masks():
    """(19, 10, 10) anti-diagonal masks, as in the PyTorch loop."""
    m = np.zeros((NUM_SUMS, 10, 10), np.float32)
    for k in range(NUM_SUMS):
        for i in range(10):
            j = k - i
            if 0 <= j < 10:
                m[k, i, j] = 1.0
    return jnp.asarray(m)


def flatten_masks(masks3d):
    """(19, 10, 10) -> (100, OUT_PAD) matmul weight, zero-padded past col 18."""
    flat = np.transpose(np.asarray(masks3d), (1, 2, 0)).reshape(100, NUM_SUMS)
    out = np.zeros((100, OUT_PAD), np.float32)
    out[:, :NUM_SUMS] = flat
    return jnp.asarray(out)


def init_params(key):
    """Deterministic PyTorch-nn.Linear-style init (uniform +/- 1/sqrt(fan_in))."""
    def linear(k, fan_in, fan_out):
        kw, kb = jax.random.split(k)
        bound = 1.0 / np.sqrt(fan_in)
        w = jax.random.uniform(kw, (fan_in, fan_out), jnp.float32, -bound, bound)
        b = jax.random.uniform(kb, (1, fan_out), jnp.float32, -bound, bound)
        return w, b

    keys = jax.random.split(key, 5)
    p = {}
    p["w1"], p["b1"] = linear(keys[0], IMG * IMG, HIDDEN)     # digit_net layer 1
    p["w2"], p["b2"] = linear(keys[1], HIDDEN, 10)            # digit_net layer 2
    p["wp"], p["bp"] = linear(keys[2], NUM_PROGRAMS, 16)      # pointer_encoder
    p["wr1"], p["br1"] = linear(keys[3], 16, 4)               # readhead1
    p["wr2"], p["br2"] = linear(keys[4], 16, 4)               # readhead2
    return p


def prepare_kernel_params(params):
    """One-time constant folding: temperature into w2/b2, fuse read heads."""
    inv_t = np.float32(1.0 / TEMPERATURE)
    return {
        "w1": params["w1"], "b1": params["b1"],
        "w2t": params["w2"] * inv_t, "b2t": params["b2"] * inv_t,
        "wp": params["wp"], "bp": params["bp"],
        "wr": jnp.concatenate([params["wr1"], params["wr2"]], axis=1),  # (16, 8)
        "br": jnp.concatenate([params["br1"], params["br2"]], axis=1),  # (1, 8)
    }


def progadd2x2_forward(grid_imgs, program_id_onehot, kparams, masks_flat,
                       tb=256):
    B = grid_imgs.shape[0]
    TB = min(B, tb)                      # batch tile (x tile = 4*TB rows)
    n_blk = pl.cdiv(B, TB)

    x = grid_imgs.reshape(B * 4, IMG * IMG).astype(jnp.float32)
    onehot = program_id_onehot.astype(jnp.float32)

    def full_spec(arr):
        nd = arr.ndim
        return pl.BlockSpec(arr.shape, lambda i, _nd=nd: (0,) * _nd)

    args = (x,
            kparams["w1"], kparams["b1"], kparams["w2t"], kparams["b2t"],
            onehot,
            kparams["wp"], kparams["bp"], kparams["wr"], kparams["br"],
            masks_flat)

    in_specs = [
        pl.BlockSpec((TB * 4, IMG * IMG), lambda i: (i, 0)),   # x: tiled over batch
        full_spec(kparams["w1"]), full_spec(kparams["b1"]),
        full_spec(kparams["w2t"]), full_spec(kparams["b2t"]),
        pl.BlockSpec((TB, NUM_PROGRAMS), lambda i: (i, 0)),    # onehot: tiled
        full_spec(kparams["wp"]), full_spec(kparams["bp"]),
        full_spec(kparams["wr"]), full_spec(kparams["br"]),
        full_spec(masks_flat),
    ]

    out_padded = pl.pallas_call(
        progadd_kernel,
        out_shape=jax.ShapeDtypeStruct((B, OUT_PAD), jnp.float32),
        grid=(n_blk,),
        in_specs=in_specs,
        out_specs=pl.BlockSpec((TB, OUT_PAD), lambda i: (i, 0)),
        compiler_params=pltpu.CompilerParams(
            dimension_semantics=("parallel",)),
    )(*args)
    return out_padded[:, :NUM_SUMS]


def progadd2x2_reference(grid_imgs, program_id_onehot, params, masks3d):
    """Pure-JAX reference mirroring the PyTorch forward (unfused, f32)."""
    B = grid_imgs.shape[0]
    x = grid_imgs.reshape(B * 4, IMG * IMG).astype(jnp.float32)
    h1 = jax.nn.relu(x @ params["w1"] + params["b1"])
    logits = h1 @ params["w2"] + params["b2"]
    dp = jax.nn.softmax(logits / TEMPERATURE, axis=-1).reshape(B, 4, 10)
    h = program_id_onehot @ params["wp"] + params["bp"]
    ptr1 = jax.nn.softmax(h @ params["wr1"] + params["br1"], axis=-1)
    ptr2 = jax.nn.softmax(h @ params["wr2"] + params["br2"], axis=-1)
    dist1 = jnp.einsum("bd,bdk->bk", ptr1, dp)
    dist2 = jnp.einsum("bd,bdk->bk", ptr2, dp)
    outer = jnp.einsum("bi,bj->bij", dist1, dist2)
    outer_sym = 0.5 * (outer + jnp.swapaxes(outer, 1, 2))
    sum_dist = jnp.einsum("bij,kij->bk", outer_sym, masks3d)
    return jnp.log(sum_dist + 1e-10)


if __name__ == "__main__":
    B = 2
    key = jax.random.PRNGKey(0)
    k_params, k_grid, k_prog = jax.random.split(key, 3)

    params = init_params(k_params)
    kparams = prepare_kernel_params(params)
    masks3d = build_masks()
    masks_flat = flatten_masks(masks3d)

    grid_imgs = jax.random.normal(k_grid, (B, 4, IMG, IMG), jnp.float32)
    prog_ids = jax.random.randint(k_prog, (B,), 0, NUM_PROGRAMS)
    program_id_onehot = jax.nn.one_hot(prog_ids, NUM_PROGRAMS, dtype=jnp.float32)

    out = progadd2x2_forward(grid_imgs, program_id_onehot, kparams, masks_flat)
    out = jax.block_until_ready(out)

    ref = progadd2x2_reference(grid_imgs, program_id_onehot, params, masks3d)
    ref = jax.block_until_ready(ref)

    assert out.shape == (B, NUM_SUMS) and out.dtype == jnp.float32
    np.testing.assert_allclose(np.asarray(out), np.asarray(ref),
                               rtol=1e-4, atol=1e-4)
    print("KERNEL_OK")
</pallas_src>

<mosaic_0001>
module attributes {stable_mosaic.version = 11 : i64} {
  func.func @progadd_kernel(%arg0: i32, %arg1: memref<8x784xf32, #tpu.memory_space<vmem>>, %arg2: memref<784x32xf32, #tpu.memory_space<vmem>>, %arg3: memref<1x32xf32, #tpu.memory_space<vmem>>, %arg4: memref<32x10xf32, #tpu.memory_space<vmem>>, %arg5: memref<1x10xf32, #tpu.memory_space<vmem>>, %arg6: memref<2x4xf32, #tpu.memory_space<vmem>>, %arg7: memref<4x16xf32, #tpu.memory_space<vmem>>, %arg8: memref<1x16xf32, #tpu.memory_space<vmem>>, %arg9: memref<16x8xf32, #tpu.memory_space<vmem>>, %arg10: memref<1x8xf32, #tpu.memory_space<vmem>>, %arg11: memref<100x128xf32, #tpu.memory_space<vmem>>, %arg12: memref<2x128xf32, #tpu.memory_space<vmem>>) attributes {dimension_semantics = [#tpu.dimension_semantics<parallel>], iteration_bounds = array<i64: 1>, scalar_prefetch = 0 : i64, scratch_operands = 0 : i64, tpu.core_type = #tpu.core_type<tc>, window_params = [{transform_indices = @transform_0, window_bounds = array<i64: 8, 784>}, {pipeline_mode = #tpu.pipeline_mode<synchronous>, transform_indices = @transform_1, window_bounds = array<i64: 784, 32>}, {pipeline_mode = #tpu.pipeline_mode<synchronous>, transform_indices = @transform_2, window_bounds = array<i64: 1, 32>}, {pipeline_mode = #tpu.pipeline_mode<synchronous>, transform_indices = @transform_3, window_bounds = array<i64: 32, 10>}, {pipeline_mode = #tpu.pipeline_mode<synchronous>, transform_indices = @transform_4, window_bounds = array<i64: 1, 10>}, {transform_indices = @transform_5, window_bounds = array<i64: 2, 4>}, {pipeline_mode = #tpu.pipeline_mode<synchronous>, transform_indices = @transform_6, window_bounds = array<i64: 4, 16>}, {pipeline_mode = #tpu.pipeline_mode<synchronous>, transform_indices = @transform_7, window_bounds = array<i64: 1, 16>}, {pipeline_mode = #tpu.pipeline_mode<synchronous>, transform_indices = @transform_8, window_bounds = array<i64: 16, 8>}, {pipeline_mode = #tpu.pipeline_mode<synchronous>, transform_indices = @transform_9, window_bounds = array<i64: 1, 8>}, {pipeline_mode = #tpu.pipeline_mode<synchronous>, transform_indices = @transform_10, window_bounds = array<i64: 100, 128>}, {transform_indices = @transform_11, window_bounds = array<i64: 2, 128>}]} {
    %c0 = arith.constant 0 : index
    %c0_0 = arith.constant 0 : index
    %0 = vector.load %arg1[%c0, %c0_0] : memref<8x784xf32, #tpu.memory_space<vmem>>, vector<8x784xf32>
    %c0_1 = arith.constant 0 : index
    %c0_2 = arith.constant 0 : index
    %1 = vector.load %arg2[%c0_1, %c0_2] : memref<784x32xf32, #tpu.memory_space<vmem>>, vector<784x32xf32>
    %cst = arith.constant dense<0.000000e+00> : vector<8x32xf32>
    %2 = tpu.matmul %0, %1, %cst {dimension_numbers = #tpu.dot_dimension_numbers<[1], [0], [0], [1], [0, 0, 1, 1], [], []>} : vector<8x784xf32>, vector<784x32xf32>, vector<8x32xf32> -> vector<8x32xf32>
    %c0_3 = arith.constant 0 : index
    %c0_4 = arith.constant 0 : index
    %3 = vector.load %arg3[%c0_3, %c0_4] : memref<1x32xf32, #tpu.memory_space<vmem>>, vector<1x32xf32>
    %4 = vector.broadcast %3 : vector<1x32xf32> to vector<8x32xf32>
    %5 = arith.addf %2, %4 : vector<8x32xf32>
    %cst_5 = arith.constant 0.000000e+00 : f32
    %6 = vector.broadcast %cst_5 : f32 to vector<8x32xf32>
    %7 = arith.maximumf %5, %6 : vector<8x32xf32>
    %c0_6 = arith.constant 0 : index
    %c0_7 = arith.constant 0 : index
    %8 = vector.load %arg4[%c0_6, %c0_7] : memref<32x10xf32, #tpu.memory_space<vmem>>, vector<32x10xf32>
    %cst_8 = arith.constant dense<0.000000e+00> : vector<8x10xf32>
    %9 = tpu.matmul %7, %8, %cst_8 {dimension_numbers = #tpu.dot_dimension_numbers<[1], [0], [0], [1], [0, 0, 1, 1], [], []>} : vector<8x32xf32>, vector<32x10xf32>, vector<8x10xf32> -> vector<8x10xf32>
    %c0_9 = arith.constant 0 : index
    %c0_10 = arith.constant 0 : index
    %10 = vector.load %arg5[%c0_9, %c0_10] : memref<1x10xf32, #tpu.memory_space<vmem>>, vector<1x10xf32>
    %11 = vector.broadcast %10 : vector<1x10xf32> to vector<8x10xf32>
    %12 = arith.addf %9, %11 : vector<8x10xf32>
    %cst_11 = arith.constant dense<0xFF800000> : vector<8xf32>
    %13 = vector.multi_reduction <maximumf>, %12, %cst_11 [1] : vector<8x10xf32> to vector<8xf32>
    %14 = vector.shape_cast %13 : vector<8xf32> to vector<8x1xf32>
    %15 = vector.broadcast %14 : vector<8x1xf32> to vector<8x10xf32>
    %16 = arith.subf %12, %15 : vector<8x10xf32>
    %17 = math.exp %16 : vector<8x10xf32>
    %cst_12 = arith.constant dense<0.000000e+00> : vector<8xf32>
    %18 = vector.multi_reduction <add>, %17, %cst_12 [1] : vector<8x10xf32> to vector<8xf32>
    %19 = vector.shape_cast %18 : vector<8xf32> to vector<8x1xf32>
    %20 = tpu.reciprocal %19 : vector<8x1xf32> -> vector<8x1xf32>
    %21 = vector.broadcast %20 : vector<8x1xf32> to vector<8x10xf32>
    %22 = arith.mulf %17, %21 : vector<8x10xf32>
    %23 = vector.shape_cast %22 : vector<8x10xf32> to vector<2x4x10xf32>
    %c0_13 = arith.constant 0 : index
    %c0_14 = arith.constant 0 : index
    %24 = vector.load %arg6[%c0_13, %c0_14] : memref<2x4xf32, #tpu.memory_space<vmem>>, vector<2x4xf32>
    %c0_15 = arith.constant 0 : index
    %c0_16 = arith.constant 0 : index
    %25 = vector.load %arg7[%c0_15, %c0_16] : memref<4x16xf32, #tpu.memory_space<vmem>>, vector<4x16xf32>
    %cst_17 = arith.constant dense<0.000000e+00> : vector<2x16xf32>
    %26 = tpu.matmul %24, %25, %cst_17 {dimension_numbers = #tpu.dot_dimension_numbers<[1], [0], [0], [1], [0, 0, 1, 1], [], []>} : vector<2x4xf32>, vector<4x16xf32>, vector<2x16xf32> -> vector<2x16xf32>
    %c0_18 = arith.constant 0 : index
    %c0_19 = arith.constant 0 : index
    %27 = vector.load %arg8[%c0_18, %c0_19] : memref<1x16xf32, #tpu.memory_space<vmem>>, vector<1x16xf32>
    %28 = vector.broadcast %27 : vector<1x16xf32> to vector<2x16xf32>
    %29 = arith.addf %26, %28 : vector<2x16xf32>
    %c0_20 = arith.constant 0 : index
    %c0_21 = arith.constant 0 : index
    %30 = vector.load %arg9[%c0_20, %c0_21] : memref<16x8xf32, #tpu.memory_space<vmem>>, vector<16x8xf32>
    %cst_22 = arith.constant dense<0.000000e+00> : vector<2x8xf32>
    %31 = tpu.matmul %29, %30, %cst_22 {dimension_numbers = #tpu.dot_dimension_numbers<[1], [0], [0], [1], [0, 0, 1, 1], [], []>} : vector<2x16xf32>, vector<16x8xf32>, vector<2x8xf32> -> vector<2x8xf32>
    %c0_23 = arith.constant 0 : index
    %c0_24 = arith.constant 0 : index
    %32 = vector.load %arg10[%c0_23, %c0_24] : memref<1x8xf32, #tpu.memory_space<vmem>>, vector<1x8xf32>
    %33 = vector.broadcast %32 : vector<1x8xf32> to vector<2x8xf32>
    %34 = arith.addf %31, %33 : vector<2x8xf32>
    %35 = vector.extract_strided_slice %34 {offsets = [0, 0], sizes = [2, 4], strides = [1, 1]} : vector<2x8xf32> to vector<2x4xf32>
    %cst_25 = arith.constant dense<0xFF800000> : vector<2xf32>
    %36 = vector.multi_reduction <maximumf>, %35, %cst_25 [1] : vector<2x4xf32> to vector<2xf32>
    %37 = vector.shape_cast %36 : vector<2xf32> to vector<2x1xf32>
    %38 = vector.broadcast %37 : vector<2x1xf32> to vector<2x4xf32>
    %39 = arith.subf %35, %38 : vector<2x4xf32>
    %40 = math.exp %39 : vector<2x4xf32>
    %cst_26 = arith.constant dense<0.000000e+00> : vector<2xf32>
    %41 = vector.multi_reduction <add>, %40, %cst_26 [1] : vector<2x4xf32> to vector<2xf32>
    %42 = vector.shape_cast %41 : vector<2xf32> to vector<2x1xf32>
    %43 = tpu.reciprocal %42 : vector<2x1xf32> -> vector<2x1xf32>
    %44 = vector.broadcast %43 : vector<2x1xf32> to vector<2x4xf32>
    %45 = arith.mulf %40, %44 : vector<2x4xf32>
    %46 = vector.extract_strided_slice %34 {offsets = [0, 4], sizes = [2, 4], strides = [1, 1]} : vector<2x8xf32> to vector<2x4xf32>
    %cst_27 = arith.constant dense<0xFF800000> : vector<2xf32>
    %47 = vector.multi_reduction <maximumf>, %46, %cst_27 [1] : vector<2x4xf32> to vector<2xf32>
    %48 = vector.shape_cast %47 : vector<2xf32> to vector<2x1xf32>
    %49 = vector.broadcast %48 : vector<2x1xf32> to vector<2x4xf32>
    %50 = arith.subf %46, %49 : vector<2x4xf32>
    %51 = math.exp %50 : vector<2x4xf32>
    %cst_28 = arith.constant dense<0.000000e+00> : vector<2xf32>
    %52 = vector.multi_reduction <add>, %51, %cst_28 [1] : vector<2x4xf32> to vector<2xf32>
    %53 = vector.shape_cast %52 : vector<2xf32> to vector<2x1xf32>
    %54 = tpu.reciprocal %53 : vector<2x1xf32> -> vector<2x1xf32>
    %55 = vector.broadcast %54 : vector<2x1xf32> to vector<2x4xf32>
    %56 = arith.mulf %51, %55 : vector<2x4xf32>
    %57 = vector.shape_cast %45 : vector<2x4xf32> to vector<2x4x1xf32>
    %58 = vector.broadcast %57 : vector<2x4x1xf32> to vector<2x4x10xf32>
    %59 = arith.mulf %58, %23 : vector<2x4x10xf32>
    %cst_29 = arith.constant dense<0.000000e+00> : vector<2x10xf32>
    %60 = vector.multi_reduction <add>, %59, %cst_29 [1] : vector<2x4x10xf32> to vector<2x10xf32>
    %61 = vector.shape_cast %56 : vector<2x4xf32> to vector<2x4x1xf32>
    %62 = vector.broadcast %61 : vector<2x4x1xf32> to vector<2x4x10xf32>
    %63 = arith.mulf %62, %23 : vector<2x4x10xf32>
    %cst_30 = arith.constant dense<0.000000e+00> : vector<2x10xf32>
    %64 = vector.multi_reduction <add>, %63, %cst_30 [1] : vector<2x4x10xf32> to vector<2x10xf32>
    %65 = vector.shape_cast %60 : vector<2x10xf32> to vector<2x10x1xf32>
    %66 = vector.shape_cast %64 : vector<2x10xf32> to vector<2x1x10xf32>
    %67 = vector.broadcast %65 : vector<2x10x1xf32> to vector<2x10x10xf32>
    %68 = vector.broadcast %66 : vector<2x1x10xf32> to vector<2x10x10xf32>
    %69 = arith.mulf %67, %68 : vector<2x10x10xf32>
    %70 = vector.shape_cast %69 : vector<2x10x10xf32> to vector<2x100xf32>
    %c0_31 = arith.constant 0 : index
    %c0_32 = arith.constant 0 : index
    %71 = vector.load %arg11[%c0_31, %c0_32] : memref<100x128xf32, #tpu.memory_space<vmem>>, vector<100x128xf32>
    %cst_33 = arith.constant dense<0.000000e+00> : vector<2x128xf32>
    %72 = tpu.matmul %70, %71, %cst_33 {dimension_numbers = #tpu.dot_dimension_numbers<[1], [0], [0], [1], [0, 0, 1, 1], [], []>} : vector<2x100xf32>, vector<100x128xf32>, vector<2x128xf32> -> vector<2x128xf32>
    %cst_34 = arith.constant 1.000000e-10 : f32
    %73 = vector.broadcast %cst_34 : f32 to vector<2x128xf32>
    %74 = arith.addf %72, %73 : vector<2x128xf32>
    %75 = math.log %74 : vector<2x128xf32>
    %c0_35 = arith.constant 0 : index
    %c0_36 = arith.constant 0 : index
    %76 = vector.load %arg12[%c0_35, %c0_36] : memref<2x128xf32, #tpu.memory_space<vmem>>, vector<2x128xf32>
    tpu.vector_store %arg12[%c0_35, %c0_36], %75 {strides = array<i32>} : memref<2x128xf32, #tpu.memory_space<vmem>>, vector<2x128xf32>,
    return
  }
  func.func @transform_0(%arg0: i32) -> (i32, i32) {
    %c0_i32 = arith.constant 0 : i32
    %c0_i32_0 = arith.constant 0 : i32
    return %arg0, %c0_i32 : i32, i32
  }
  func.func @transform_1(%arg0: i32) -> (i32, i32) {
    %c0_i32 = arith.constant 0 : i32
    %c0_i32_0 = arith.constant 0 : i32
    %c0_i32_1 = arith.constant 0 : i32
    return %c0_i32, %c0_i32_0 : i32, i32
  }
  func.func @transform_2(%arg0: i32) -> (i32, i32) {
    %c0_i32 = arith.constant 0 : i32
    %c0_i32_0 = arith.constant 0 : i32
    %c0_i32_1 = arith.constant 0 : i32
    return %c0_i32, %c0_i32_0 : i32, i32
  }
  func.func @transform_3(%arg0: i32) -> (i32, i32) {
    %c0_i32 = arith.constant 0 : i32
    %c0_i32_0 = arith.constant 0 : i32
    %c0_i32_1 = arith.constant 0 : i32
    return %c0_i32, %c0_i32_0 : i32, i32
  }
  func.func @transform_4(%arg0: i32) -> (i32, i32) {
    %c0_i32 = arith.constant 0 : i32
    %c0_i32_0 = arith.constant 0 : i32
    %c0_i32_1 = arith.constant 0 : i32
    return %c0_i32, %c0_i32_0 : i32, i32
  }
  func.func @transform_5(%arg0: i32) -> (i32, i32) {
    %c0_i32 = arith.constant 0 : i32
    %c0_i32_0 = arith.constant 0 : i32
    return %arg0, %c0_i32 : i32, i32
  }
  func.func @transform_6(%arg0: i32) -> (i32, i32) {
    %c0_i32 = arith.constant 0 : i32
    %c0_i32_0 = arith.constant 0 : i32
    %c0_i32_1 = arith.constant 0 : i32
    return %c0_i32, %c0_i32_0 : i32, i32
  }
  func.func @transform_7(%arg0: i32) -> (i32, i32) {
    %c0_i32 = arith.constant 0 : i32
    %c0_i32_0 = arith.constant 0 : i32
    %c0_i32_1 = arith.constant 0 : i32
    return %c0_i32, %c0_i32_0 : i32, i32
  }
  func.func @transform_8(%arg0: i32) -> (i32, i32) {
    %c0_i32 = arith.constant 0 : i32
    %c0_i32_0 = arith.constant 0 : i32
    %c0_i32_1 = arith.constant 0 : i32
    return %c0_i32, %c0_i32_0 : i32, i32
  }
  func.func @transform_9(%arg0: i32) -> (i32, i32) {
    %c0_i32 = arith.constant 0 : i32
    %c0_i32_0 = arith.constant 0 : i32
    %c0_i32_1 = arith.constant 0 : i32
    return %c0_i32, %c0_i32_0 : i32, i32
  }
  func.func @transform_10(%arg0: i32) -> (i32, i32) {
    %c0_i32 = arith.constant 0 : i32
    %c0_i32_0 = arith.constant 0 : i32
    %c0_i32_1 = arith.constant 0 : i32
    return %c0_i32, %c0_i32_0 : i32, i32
  }
  func.func @transform_11(%arg0: i32) -> (i32, i32) {
    %c0_i32 = arith.constant 0 : i32
    %c0_i32_0 = arith.constant 0 : i32
    return %arg0, %c0_i32 : i32, i32
  }
}

</mosaic_0001>

<bundles_post_ra>
// kernel: tpu_custom_call.1
= control target key start
LH: loop header
LB: loop body
LE: loop exit
PB: predicated region body
PF: predicated region fallthrough
CT: control target
= control target key end

     0   :  { %s1958_s0 = inlined_call_operand.vmem [shape: f32[8,784], index: 0, kind: input, shape index: {}]   ;;  %s1959_s1 = inlined_call_operand.vmem [shape: f32[784,32], index: 1, kind: input, shape index: {}]   ;;  %s1960_s2 = inlined_call_operand.vmem [shape: f32[1,32], index: 2, kind: input, shape index: {}]   ;;  %s1961_s3 = inlined_call_operand.vmem [shape: f32[32,10], index: 3, kind: input, shape index: {}]   ;;  %s1962_s4 = inlined_call_operand.vmem [shape: f32[1,10], index: 4, kind: input, shape index: {}]   ;;  %s1963_s5 = inlined_call_operand.vmem [shape: f32[2,4], index: 5, kind: input, shape index: {}]   ;;  %s1964_s6 = inlined_call_operand.vmem [shape: f32[4,16], index: 6, kind: input, shape index: {}]   ;;  %s1965_s7 = inlined_call_operand.vmem [shape: f32[1,16], index: 7, kind: input, shape index: {}]   ;;  %s1966_s8 = inlined_call_operand.vmem [shape: f32[16,8], index: 8, kind: input, shape index: {}]   ;;  %s1967_s9 = inlined_call_operand.vmem [shape: f32[1,8], index: 9, kind: input, shape index: {}]   ;;  %s1968_s10 = inlined_call_operand.vmem [shape: f32[100,128], index: 10, kind: input, shape index: {}]   ;;  %s1969_s11 = inlined_call_operand.hbm [shape: f32[2,128], index: 11, kind: output, shape index: {}]  }
   0x1   :  { %v62_v0 = vld [vmem:[%s1959_s1 + $0x80] sm:$0xff]  ;;  %v63_v1 = vld [vmem:[%s1959_s1 + $0x88] sm:$0xff]  ;;  %v64_v11 = vld [vmem:[%s1959_s1 + $0x90] sm:$0xff] }
   0x2   :  { %v94_v2 = vld [vmem:[%s1959_s1 + $0x180] sm:$0xff]  ;;  %v1251_v3 = vpack.c.bf16 %v63_v1, %v62_v0  ;;  %v95_v4 = vld [vmem:[%s1959_s1 + $0x188] sm:$0xff]  ;;  %v65_v13 = vld [vmem:[%s1959_s1 + $0x98] sm:$0xff] }
   0x3   :  { %v46_v5 = vld [vmem:[%s1959_s1] sm:$0xff]  ;;  %v47_v6 = vld [vmem:[%s1959_s1 + $0x8] sm:$0xff]  ;;  %v1283_v7 = vpack.c.bf16 %v95_v4, %v94_v2  ;;  %v96_v14 = vld [vmem:[%s1959_s1 + $0x190] sm:$0xff]  ;;  %v1255_v16 = vpack.c.bf16 %v65_v13, %v64_v11 }
   0x4   :  { %v1253_v8 = vpack.c.bf16 %v47_v6, %v46_v5  ;;  %v78_v9 = vld [vmem:[%s1959_s1 + $0x100] sm:$0xff]  ;;  %v79_v10 = vld [vmem:[%s1959_s1 + $0x108] sm:$0xff]  ;;  %1252 = vmatprep.subr.bf16.mxu0 %v1251_v3  ;;  %v97_v15 = vld [vmem:[%s1959_s1 + $0x198] sm:$0xff] }
   0x5   :  { %v1285_v12 = vpack.c.bf16 %v79_v10, %v78_v9  ;;  %1284 = vmatprep.subr.bf16.mxu1 %v1283_v7  ;;  %v1287_v17 = vpack.c.bf16 %v97_v15, %v96_v14  ;;  %v48_v18 = vld [vmem:[%s1959_s1 + $0x10] sm:$0xff]  ;;  %v49_v19 = vld [vmem:[%s1959_s1 + $0x18] sm:$0xff]  ;;  %v66_v23 = vld [vmem:[%s1959_s1 + $0xa0] sm:$0xff] }
   0x6   :  { %1254 = vmatpush3.bf16.msra.mxu0 %v1253_v8  ;;  %v80_v20 = vld [vmem:[%s1959_s1 + $0x110] sm:$0xff]  ;;  %v1257_v21 = vpack.c.bf16 %v49_v19, %v48_v18  ;;  %v81_v22 = vld [vmem:[%s1959_s1 + $0x118] sm:$0xff]  ;;  %v67_v24 = vld [vmem:[%s1959_s1 + $0xa8] sm:$0xff] }
   0x7   :  { %1286 = vmatpush3.bf16.msra.mxu1 %v1285_v12  ;;  %1256 = vmatprep.subr.bf16.mxu0 %v1255_v16  ;;  %v1289_v25 = vpack.c.bf16 %v81_v22, %v80_v20  ;;  %v1259_v26 = vpack.c.bf16 %v67_v24, %v66_v23  ;;  %v98_v27 = vld [vmem:[%s1959_s1 + $0x1a0] sm:$0xff]  ;;  %v99_v28 = vld [vmem:[%s1959_s1 + $0x1a8] sm:$0xff]  ;;  %v68_v35 = vld [vmem:[%s1959_s1 + $0xb0] sm:$0xff] }
   0x8   :  { %1288 = vmatprep.subr.bf16.mxu1 %v1287_v17  ;;  %v50_v29 = vld [vmem:[%s1959_s1 + $0x20] sm:$0xff]  ;;  %v1291_v30 = vpack.c.bf16 %v99_v28, %v98_v27  ;;  %v51_v31 = vld [vmem:[%s1959_s1 + $0x28] sm:$0xff]  ;;  %v69_v36 = vld [vmem:[%s1959_s1 + $0xb8] sm:$0xff] }
   0x9   :  { %v82_v32 = vld [vmem:[%s1959_s1 + $0x120] sm:$0xff]  ;;  %v83_v33 = vld [vmem:[%s1959_s1 + $0x128] sm:$0xff]  ;;  %v1261_v34 = vpack.c.bf16 %v51_v31, %v50_v29  ;;  %v100_v37 = vld [vmem:[%s1959_s1 + $0x1b0] sm:$0xff]  ;;  %v1263_v39 = vpack.c.bf16 %v69_v36, %v68_v35 }
   0xa   :  { %1258 = vmatpush3.bf16.msra.mxu0 %v1257_v21  ;;  %v1293_v38 = vpack.c.bf16 %v83_v33, %v82_v32  ;;  %v101_v40 = vld [vmem:[%s1959_s1 + $0x1b8] sm:$0xff]  ;;  %v52_v41 = vld [vmem:[%s1959_s1 + $0x30] sm:$0xff]  ;;  %v70_v46 = vld [vmem:[%s1959_s1 + $0xc0] sm:$0xff] }
   0xb   :  { %1290 = vmatpush3.bf16.msra.mxu1 %v1289_v25  ;;  %1260 = vmatprep.subr.bf16.mxu0 %v1259_v26  ;;  %v53_v42 = vld [vmem:[%s1959_s1 + $0x38] sm:$0xff]  ;;  %v1295_v43 = vpack.c.bf16 %v101_v40, %v100_v37  ;;  %v84_v44 = vld [vmem:[%s1959_s1 + $0x130] sm:$0xff]  ;;  %v71_v47 = vld [vmem:[%s1959_s1 + $0xc8] sm:$0xff] }
   0xc   :  { %1292 = vmatprep.subr.bf16.mxu1 %v1291_v30  ;;  %v85_v45 = vld [vmem:[%s1959_s1 + $0x138] sm:$0xff]  ;;  %v102_v48 = vld [vmem:[%s1959_s1 + $0x1c0] sm:$0xff]  ;;  %v103_v49 = vld [vmem:[%s1959_s1 + $0x1c8] sm:$0xff]  ;;  %v1265_v50 = vpack.c.bf16 %v53_v42, %v52_v41  ;;  %v1267_v52 = vpack.c.bf16 %v71_v47, %v70_v46 }
   0xd   :  { %v1297_v51 = vpack.c.bf16 %v85_v45, %v84_v44  ;;  %v54_v53 = vld [vmem:[%s1959_s1 + $0x40] sm:$0xff]  ;;  %v55_v54 = vld [vmem:[%s1959_s1 + $0x48] sm:$0xff]  ;;  %v1299_v56 = vpack.c.bf16 %v103_v49, %v102_v48  ;;  %v72_v58 = vld [vmem:[%s1959_s1 + $0xd0] sm:$0xff]  ;;  %v1431_v49 = vmov 0.0|0.0  }
   0xe   :  { %1262 = vmatpush3.bf16.msra.mxu0 %v1261_v34  ;;  %v86_v55 = vld [vmem:[%s1959_s1 + $0x140] sm:$0xff]  ;;  %v87_v57 = vld [vmem:[%s1959_s1 + $0x148] sm:$0xff]  ;;  %v73_v59 = vld [vmem:[%s1959_s1 + $0xd8] sm:$0xff]  ;;  %v1269_v62 = vpack.c.bf16 %v55_v54, %v54_v53 }
   0xf   :  { %1294 = vmatpush3.bf16.msra.mxu1 %v1293_v38  ;;  %1264 = vmatprep.subr.bf16.mxu0 %v1263_v39  ;;  %v104_v60 = vld [vmem:[%s1959_s1 + $0x1d0] sm:$0xff]  ;;  %v105_v61 = vld [vmem:[%s1959_s1 + $0x1d8] sm:$0xff]  ;;  %v1301_v63 = vpack.c.bf16 %v87_v57, %v86_v55  ;;  %v1271_v0 = vpack.c.bf16 %v73_v59, %v72_v58  ;;  %v74_v6 = vld [vmem:[%s1959_s1 + $0xe0] sm:$0xff] }
  0x10   :  { %1296 = vmatprep.subr.bf16.mxu1 %v1295_v43  ;;  %v56_v1 = vld [vmem:[%s1959_s1 + $0x50] sm:$0xff]  ;;  %v57_v2 = vld [vmem:[%s1959_s1 + $0x58] sm:$0xff]  ;;  %v1303_v4 = vpack.c.bf16 %v105_v61, %v104_v60  ;;  %v75_v7 = vld [vmem:[%s1959_s1 + $0xe8] sm:$0xff] }
  0x11   :  { %v88_v3 = vld [vmem:[%s1959_s1 + $0x150] sm:$0xff]  ;;  %v89_v5 = vld [vmem:[%s1959_s1 + $0x158] sm:$0xff]  ;;  %v106_v8 = vld [vmem:[%s1959_s1 + $0x1e0] sm:$0xff]  ;;  %v1273_v10 = vpack.c.bf16 %v57_v2, %v56_v1  ;;  %v1275_v14 = vpack.c.bf16 %v75_v7, %v74_v6 }
  0x12   :  { %1266 = vmatpush3.bf16.msra.mxu0 %v1265_v50  ;;  %v107_v9 = vld [vmem:[%s1959_s1 + $0x1e8] sm:$0xff]  ;;  %v58_v11 = vld [vmem:[%s1959_s1 + $0x60] sm:$0xff]  ;;  %v1305_v13 = vpack.c.bf16 %v89_v5, %v88_v3  ;;  %v42_v17 = vld [vmem:[%s1958_s0 + $0x18] sm:$0xff] }
  0x13   :  { %1298 = vmatpush3.bf16.msra.mxu1 %v1297_v51  ;;  %1268 = vmatprep.subr.bf16.mxu0 %v1267_v52  ;;  %v59_v12 = vld [vmem:[%s1959_s1 + $0x68] sm:$0xff]  ;;  %v90_v15 = vld [vmem:[%s1959_s1 + $0x160] sm:$0xff]  ;;  %v1307_v18 = vpack.c.bf16 %v107_v9, %v106_v8  ;;  %v76_v20 = vld [vmem:[%s1959_s1 + $0xf0] sm:$0xff] }
  0x14   :  { %1300 = vmatprep.subr.bf16.mxu1 %v1299_v56  ;;  %v40_v16 = vld [vmem:[%s1958_s0 + $0x8] sm:$0xff]  ;;  %v77_v21 = vld [vmem:[%s1959_s1 + $0xf8] sm:$0xff]  ;;  %v108_v22 = vld [vmem:[%s1959_s1 + $0x1f0] sm:$0xff]  ;;  %289 = vmatprep.mubr.f32.mxu1 %v42_v17  ;;  %v1277_v24 = vpack.c.bf16 %v59_v12, %v58_v11 }
  0x15   :  { %v91_v19 = vld [vmem:[%s1959_s1 + $0x168] sm:$0xff]  ;;  %219 = vmatprep.mubr.f32.mxu0 %v40_v16  ;;  %v109_v23 = vld [vmem:[%s1959_s1 + $0x1f8] sm:$0xff]  ;;  %v1279_v26 = vpack.c.bf16 %v77_v21, %v76_v20  ;;  %v60_v27 = vld [vmem:[%s1959_s1 + $0x70] sm:$0xff] }
  0x16   :  { %1270 = vmatpush3.bf16.msra.mxu0 %v1269_v62  ;;  %v1309_v25 = vpack.c.bf16 %v91_v19, %v90_v15  ;;  %v61_v28 = vld [vmem:[%s1959_s1 + $0x78] sm:$0xff]  ;;  %v92_v29 = vld [vmem:[%s1959_s1 + $0x170] sm:$0xff]  ;;  %v1311_v30 = vpack.c.bf16 %v109_v23, %v108_v22  ;;  %v126_v32 = vld [vmem:[%s1959_s1 + $0x280] sm:$0xff] }
  0x17   :  { %1302 = vmatpush3.bf16.msra.mxu1 %v1301_v63  ;;  %1272 = vmatprep.subr.bf16.mxu0 %v1271_v0  ;;  %v93_v31 = vld [vmem:[%s1959_s1 + $0x178] sm:$0xff]  ;;  %v127_v33 = vld [vmem:[%s1959_s1 + $0x288] sm:$0xff]  ;;  %v1281_v34 = vpack.c.bf16 %v61_v28, %v60_v27  ;;  %v110_v37 = vld [vmem:[%s1959_s1 + $0x200] sm:$0xff] }
  0x18   :  { %1304 = vmatprep.subr.bf16.mxu1 %v1303_v4  ;;  %v1313_v35 = vpack.c.bf16 %v93_v31, %v92_v29  ;;  %v1315_v36 = vpack.c.bf16 %v127_v33, %v126_v32  ;;  %v111_v38 = vld [vmem:[%s1959_s1 + $0x208] sm:$0xff]  ;;  %v142_v39 = vld [vmem:[%s1959_s1 + $0x300] sm:$0xff]  ;;  %v128_v41 = vld [vmem:[%s1959_s1 + $0x290] sm:$0xff] }
  0x19   :  { %v143_v40 = vld [vmem:[%s1959_s1 + $0x308] sm:$0xff]  ;;  %v129_v42 = vld [vmem:[%s1959_s1 + $0x298] sm:$0xff]  ;;  %v39_v43 = vld [vmem:[%s1958_s0] sm:$0xff]  ;;  %v1317_v44 = vpack.c.bf16 %v111_v38, %v110_v37 }
  0x1a   :  { %1274 = vmatpush3.bf16.msra.mxu0 %v1273_v10  ;;  %v41_v45 = vld [vmem:[%s1958_s0 + $0x10] sm:$0xff]  ;;  %v1348_v46 = vpack.c.bf16 %v143_v40, %v142_v39  ;;  %v113_v48 = vld [vmem:[%s1959_s1 + $0x218] sm:$0xff]  ;;  %v1319_v50 = vpack.c.bf16 %v129_v42, %v128_v41  ;;  %v130_v51 = vld [vmem:[%s1959_s1 + $0x2a0] sm:$0xff] }
  0x1b   :  { %1306 = vmatpush3.bf16.msra.mxu1 %v1305_v13  ;;  %1276 = vmatprep.subr.bf16.mxu0 %v1275_v14  ;;  %v112_v47 = vld [vmem:[%s1959_s1 + $0x210] sm:$0xff]  ;;  %v131_v52 = vld [vmem:[%s1959_s1 + $0x2a8] sm:$0xff] }
  0x1c   :  { %1308 = vmatprep.subr.bf16.mxu1 %v1307_v18 }
  0x1e   :  { %1278 = vmatpush3.bf16.msra.mxu0 %v1277_v24 }
  0x1f   :  { %1310 = vmatpush3.bf16.msra.mxu1 %v1309_v25  ;;  %1280 = vmatprep.subr.bf16.mxu0 %v1279_v26 }
  0x20   :  { %1312 = vmatprep.subr.bf16.mxu1 %v1311_v30 }
  0x22   :  { %1282 = vmatpush3.bf16.msra.mxu0 %v1281_v34 }
  0x23   :  { %1314 = vmatpush3.bf16.msra.mxu1 %v1313_v35  ;;  %1316 = vmatprep.subr.bf16.mxu0 %v1315_v36 }
  0x24   :  { %1347 = vmatprep.subr.bf16.mxu1 %v1431_v49 }
  0x25   :  { %220 = vmatmul.mubr.f32.vlgmr.msra.gmra.mrb[0].mxu0 %v39_v43 }
  0x26   :  { %16 = vsyncpa [#allocation3], 0  ;;  %290 = vmatmul.mubr.f32.vlgmr.msra.gmra.mrb[0].mxu1 %v41_v45  ;;  %1318 = vmatpush3.bf16.msra.mxu0 %v1317_v44  ;;  %v1321_v53 = vpack.c.bf16 %v113_v48, %v112_v47  ;;  %v44_v54 = vld [vmem:[%s1958_s0 + $0x28] sm:$0xff]  ;;  %vm1432_vm0 = vmmov 0   ;;  %v1433_v55 = vmov 0.0   ;;  %v45_v56 = vld [vmem:[%s1958_s0 + $0x30] sm:$0xff]  ;;  %v1323_v60 = vpack.c.bf16 %v131_v52, %v130_v51 }
  0x27   :  { %1349 = vmatpush3.bf16.msra.mxu1 %v1348_v46  ;;  %1196 = vmatprep.mubr.msk.f32.mxu1 %vm1432_vm0, %v1433_v55  ;;  %vm151_vm1 = vcmask 130048   ;;  %v114_v57 = vld [vmem:[%s1959_s1 + $0x220] sm:$0xff]  ;;  %v115_v58 = vld [vmem:[%s1959_s1 + $0x228] sm:$0xff]  ;;  %vm549_vm2 = vcmask 1043456   ;;  %v132_v61 = vld [vmem:[%s1959_s1 + $0x2b0] sm:$0xff]  ;;  %vm545_vm3 = vcmask 31744  }
  0x28   :  { %1320 = vmatprep.subr.bf16.mxu0 %v1319_v50  ;;  %1210 = vmatprep.subr.mxu1 %v1433_v55  ;;  %v537_v59 = vld [vmem:[%s1964_s6] sm:$0xf]  ;;  %v133_v62 = vld [vmem:[%s1959_s1 + $0x2b8] sm:$0xff]  ;;  %v1325_v63 = vpack.c.bf16 %v115_v58, %v114_v57  ;;  %v116_v2 = vld [vmem:[%s1959_s1 + $0x230] sm:$0xff]  ;;  %vm447_vm4 = vcmask 261120   ;;  %vm705_vm5 = vcmask 25600  }
  0x29   :  { %359 = vmatprep.mubr.f32.mxu0 %v44_v54  ;;  %v536_v0 = vld [vmem:[%s1963_s5] sm:$0x3]  ;;  %v1327_v1 = vpack.c.bf16 %v133_v62, %v132_v61  ;;  %v117_v3 = vld [vmem:[%s1959_s1 + $0x238] sm:$0xff]  ;;  %v135_v5 = vld [vmem:[%s1959_s1 + $0x2c8] sm:$0xff]  ;;  %vm717_vm6 = vcmask 58400   ;;  %vm521_vm7 = vcmask 80896  }
  0x2a   :  { %1197 = vmatmul.mubr.msk.f32.vlgmr.msra.gmra.mrb[2].mxu1 %vm151_vm1, %v45_v56  ;;  %1322 = vmatpush3.bf16.msra.mxu0 %v1321_v53  ;;  %v134_v4 = vld [vmem:[%s1959_s1 + $0x2c0] sm:$0xff]  ;;  %v1329_v6 = vpack.c.bf16 %v117_v3, %v116_v2  ;;  %v119_v9 = vld [vmem:[%s1959_s1 + $0x248] sm:$0xff]  ;;  %v136_v10 = vld [vmem:[%s1959_s1 + $0x2d0] sm:$0xff]  ;;  %vm749_vm8 = vcmask 76800   ;;  %s1441_s30 = smov 60   ;;  %s1442_s12 = smov 50  }
  0x2b   :  { %1211 = vmatpush3.msk.msra.mxu1 %vm549_vm2, %v537_v59  ;;  %1212 = vmatprep.mubr.msk.f32.mxu1 %vm1432_vm0, %v1433_v55  ;;  %v1331_v7 = vpack.c.bf16 %v135_v5, %v134_v4  ;;  %v118_v8 = vld [vmem:[%s1959_s1 + $0x240] sm:$0xff]  ;;  %v137_v11 = vld [vmem:[%s1959_s1 + $0x2d8] sm:$0xff]  ;;  %v120_v14 = vld [vmem:[%s1959_s1 + $0x250] sm:$0xff]  ;;  %s1443_s13 = smov 80   ;;  %s1444_s14 = smov 70   ;;  %vm926_vm9 = vcmask 162816  }
  0x2c   :  { %1324 = vmatprep.subr.bf16.mxu0 %v1323_v60  ;;  %1356 = vmatprep.subr.bf16.mxu1 %v1431_v49  ;;  %v1333_v12 = vpack.c.bf16 %v119_v9, %v118_v8  ;;  %v1335_v13 = vpack.c.bf16 %v137_v11, %v136_v10  ;;  %v121_v15 = vld [vmem:[%s1959_s1 + $0x258] sm:$0xff]  ;;  %v138_v16 = vld [vmem:[%s1959_s1 + $0x2e0] sm:$0xff]  ;;  %v139_v17 = vld [vmem:[%s1959_s1 + $0x2e8] sm:$0xff]  ;;  %vm928_vm10 = vcmask 244736   ;;  %vm930_vm11 = vcmask 326656   ;;  %s1446_s15 = smov [#allocation2]  }
  0x2d   :  { %v1337_v18 = vpack.c.bf16 %v121_v15, %v120_v14  ;;  %v1339_v19 = vpack.c.bf16 %v139_v17, %v138_v16  ;;  %v122_v20 = vld [vmem:[%s1959_s1 + $0x260] sm:$0xff]  ;;  %v123_v21 = vld [vmem:[%s1959_s1 + $0x268] sm:$0xff]  ;;  %v140_v22 = vld [vmem:[%s1959_s1 + $0x2f0] sm:$0xff]  ;;  %vm932_vm12 = vcmask 408576   ;;  %vm934_vm13 = vcmask 490496   ;;  %s1041_s16 = sshll.u32 %s1446_s15, 4  ;;  %s1042_s16 = int_to_ptr.vmem [resolvable:$true] %s1041_s16 }
  0x2e   :  { %1213 = vmatmul.mubr.msk.f32.vlgmr.msra.gmra.mrb[4].mxu1 %vm545_vm3, %v536_v0  ;;  %1326 = vmatpush3.bf16.msra.mxu0 %v1325_v63  ;;  %v141_v23 = vld [vmem:[%s1959_s1 + $0x2f8] sm:$0xff]  ;;  %v1341_v24 = vpack.c.bf16 %v123_v21, %v122_v20  ;;  %v124_v26 = vld [vmem:[%s1959_s1 + $0x270] sm:$0xff]  ;;  %v43_v29 = vld [vmem:[%s1958_s0 + $0x20] sm:$0xff]  ;;  %vm936_vm14 = vcmask 572416   ;;  %vm938_vm15 = vcmask 654336   ;;  %s1407_s17 = scalar_lea.vmem %s1042_s16, 32  ;;  %p1412_p1 = scmp.lt.s32.totalorder %s1042_s16, %s1042_s16 }
  0x2f   :  { %1328 = vmatprep.subr.bf16.mxu0 %v1327_v1  ;;  %1219 = vmatprep.mubr.msk.f32.mxu1 %vm1432_vm0, %v1433_v55  ;;  %v1343_v25 = vpack.c.bf16 %v141_v23, %v140_v22  ;;  %v125_v27 = vld [vmem:[%s1959_s1 + $0x278] sm:$0xff]  ;;  %v623_v30 = vld [vmem:[%s1966_s8] sm:$0xff]  ;;  %v624_v31 = vld [vmem:[%s1966_s8 + $0x8] sm:$0xff]  ;;  %p1408_p0 = scmp.ne.s32.totalorder %s1042_s16, %s1407_s17  ;;  %p1413_p2 = scmp.lt.s32.totalorder %s1407_s17, %s1407_s17 }
  0x30   :  { %v1345_v28 = vpack.c.bf16 %v125_v27, %v124_v26  ;;  %v1357_v32 = vpack.c.bf16 %v624_v31, %v623_v30  ;;  %v436_v33 = vld [vmem:[%s1961_s3] sm:$0xff]  ;;  %v437_v34 = vld [vmem:[%s1961_s3 + $0x8] sm:$0xff]  ;;  %v438_v36 = vld [vmem:[%s1961_s3 + $0x10] sm:$0xff]  ;;  %v733_v26 = vlaneseq }
  0x31   :  { %v1351_v35 = vpack.c.bf16 %v437_v34, %v436_v33  ;;  %v439_v37 = vld [vmem:[%s1961_s3 + $0x18] sm:$0xff]  ;;  %v1049_v41 = vld [vmem:[%s1960_s2] ss:$0 sm:$0xff]  ;;  %s1437_s2 = smov 20   ;;  %s1438_s3 = smov 10  }
  0x32   :  { %1330 = vmatpush3.bf16.msra.mxu0 %v1329_v6  ;;  %1358 = vmatpush3.bf16.msra.mxu1 %v1357_v32  ;;  %v1354_v38 = vpack.c.bf16 %v439_v37, %v438_v36  ;;  %v1053_v51 = vld [vmem:[%s1965_s7] ss:$0 sm:$0xff]  ;;  %v1882_v27 = vshrl.u32 %v733_v26, 7  ;;  %s1439_s7 = smov 40   ;;  %p1414_p3 = por %p1413_p2, %p1412_p1 }
  0x33   :  { %1332 = vmatprep.subr.bf16.mxu0 %v1331_v7  ;;  %1359 = vmatprep.subr.bf16.mxu1 %v1431_v49  ;;  %v1056_v62 = vld [vmem:[%s1967_s9] ss:$0 sm:$0xff]  ;;  %s1440_s9 = smov 30  }
  0x34   :  { %v1051_v4 = vld [vmem:[%s1962_s4] ss:$0 sm:$0xff]  ;;  %s1434_s4 = smov 124   ;;  %p1415_p4 = pnand %p1414_p3, %p1408_p0 }
  0x36   :  { %1334 = vmatpush3.bf16.msra.mxu0 %v1333_v12 }
  0x37   :  { %1336 = vmatprep.subr.bf16.mxu0 %v1335_v13 }
  0x3a   :  { %1338 = vmatpush3.bf16.msra.mxu0 %v1337_v18 }
  0x3b   :  { %1340 = vmatprep.subr.bf16.mxu0 %v1339_v19 }
  0x3e   :  { %1342 = vmatpush3.bf16.msra.mxu0 %v1341_v24 }
  0x3f   :  { %1344 = vmatprep.subr.bf16.mxu0 %v1343_v25 }
  0x42   :  { %1346 = vmatpush3.bf16.msra.mxu0 %v1345_v28  ;;  %v742_v28 = vsub.s32 1, %v1882_v27 }
  0x43   :  { %1350 = vmatprep.subr.bf16.mxu0 %v1431_v49 }
  0x45   :  { %360 = vmatmul.mubr.f32.vlgmr.msra.gmra.mrb[2].mxu0 %v43_v29  ;;  %v735_v29 = vsub.s32 0, %v1882_v27 }
  0x46   :  { %1207 = vmatprep.mubr.msk.f32.mxu0 %vm1432_vm0, %v1433_v55  ;;  %1352 = vmatpush3.bf16.msra.mxu0 %v1351_v35 }
  0x47   :  { %1353 = vmatprep.subr.bf16.mxu0 %v1431_v49 }
  0x4a   :  { %1355 = vmatpush3.bf16.msra.mxu0 %v1354_v38 }
  0xf8   :  { %v1092_v39 = vpop.f32.mrb[0].mxu0 }
  0xf9   :  { %v1127_v40 = vpop.f32.mrb[0].mxu1  ;;  %v1093_v42 = vpop.f32.mrb[1].mxu0 }
  0xfa   :  { %v1094_v43 = vadd.f32 %v1093_v42, %v1092_v39  ;;  %v1128_v44 = vpop.f32.mrb[1].mxu1 }
  0xfb   :  { %v1129_v45 = vadd.f32 %v1128_v44, %v1127_v40 }
  0xfc   :  { %v222_v46 = vadd.f32 %v1094_v43, %v1049_v41 }
  0xfd   :  { %v431_v47 = vpop.f32.mrb[2].mxu1 }
  0xfe   :  { %v292_v48 = vadd.f32 %v1129_v45, %v222_v46  ;;  %v1198_v50 = vpop.f32.mrb[3].mxu1 }
 0x101   :  { %v619_v52 = vpop.f32.mrb[4].mxu1 }
 0x102   :  { %v620_v53 = vadd.f32 %v1053_v51, %v619_v52  ;;  %v1214_v54 = vpop.f32.mrb[5].mxu1 }
 0x104   :  { %1220 = vmatmul.mubr.msk.f32.vlgmr.msra.gmra.mrb[6].mxu1 %vm151_vm1, %v620_v53  ;;  %vm955_vm1 = vcmask 818176  }
 0x105   :  { %1248 = vmatprep.mubr.msk.f32.mxu1 %vm1432_vm0, %v1433_v55  ;;  %vm940_vm0 = vcmask 736256  }
 0x118   :  { %v1162_v56 = vpop.f32.mrb[2].mxu0 }
 0x119   :  { %v1163_v57 = vpop.f32.mrb[3].mxu0 }
 0x11a   :  { %v1164_v58 = vadd.f32 %v1163_v57, %v1162_v56 }
 0x11c   :  { %v362_v59 = vadd.f32 %v1164_v58, %v292_v48 }
 0x11e   :  { %v432_v60 = vadd.f32 %v431_v47, %v362_v59 }
 0x120   :  { %v435_v61 = vmax.f32 %v432_v60, 0.0 }
 0x122   :  { %1208 = vmatmul.mubr.msk.f32.vlgmr.msra.gmra.mrb[4].mxu0 %vm447_vm4, %v435_v61 }
 0x1d7   :  { %v701_v63 = vpop.f32.mrb[6].mxu1 }
 0x1d8   :  { %v702_v0 = vadd.f32 %v1056_v62, %v701_v63  ;;  %v1221_v1 = vpop.f32.mrb[7].mxu1  ;;  %v942_v63 = vld [vmem:[%s1968_s10] sm:$0xff] }
 0x1d9   :  { %v944_v1 = vld [vmem:[%s1968_s10 + $0x10] sm:$0xff] }
 0x1da   :  { %v706_v2 = vsel %vm705_vm5, %v702_v0, -inf  ;;  %v718_v3 = vsel %vm717_vm6, %v702_v0, -inf }
 0x1db   :  { %707 = vmax.xlane.f32.xlu0 %v706_v2 }
 0x1df   :  { %719 = vmax.xlane.f32.xlu0 %v718_v3  ;;  %v945_v3 = vld [vmem:[%s1968_s10 + $0x18] sm:$0xff] }
 0x1f5   :  { %v517_v5 = vpop.f32.mrb[4].mxu0 }
 0x1f6   :  { %v518_v6 = vadd.f32 %v1051_v4, %v517_v5  ;;  %v1209_v7 = vpop.f32.mrb[5].mxu0  ;;  %v1363_v4 = vpack.c.bf16 %v945_v3, %v944_v1 }
 0x1f8   :  { %v522_v8 = vsel %vm521_vm7, %v518_v6, -inf }
 0x1f9   :  { %523 = vmax.xlane.f32.xlu1 %v522_v8 }
 0x268   :  { %v708_v9 = vpop.xlane.xlu0 %707 }
 0x269   :  { %v709_v10 = vsub.f32 %v702_v0, %v708_v9 }
 0x26b   :  { %v710_v11 = vmul.f32 1.442695, %v709_v10 }
 0x26c   :  { %v720_v12 = vpop.xlane.xlu0 %719 }
 0x26d   :  { %1393 = vpow2.f32 %v710_v11  ;;  %v721_v13 = vsub.f32 %v702_v0, %v720_v12  ;;  %v943_v0 = vld [vmem:[%s1968_s10 + $0x8] sm:$0xff] }
 0x26e   :  { %v1360_v2 = vpack.c.bf16 %v943_v0, %v942_v63 }
 0x26f   :  { %v722_v14 = vmul.f32 1.442695, %v721_v13 }
 0x270   :  { %1361 = vmatpush3.bf16.msra.mxu1 %v1360_v2 }
 0x271   :  { %1395 = vpow2.f32 %v722_v14  ;;  %1362 = vmatprep.subr.bf16.mxu1 %v1431_v49 }
 0x274   :  { %1364 = vmatpush3.bf16.msra.mxu1 %v1363_v4  ;;  %v954_v4 = vld [vmem:[%s1968_s10 + $0x60] sm:$0xf] }
 0x275   :  { %1365 = vmatprep.subr.bf16.mxu1 %v1431_v49 }
 0x277   :  { %v1394_v15 = vpop.eup %1393 }
 0x278   :  { %v712_v16 = vsel %vm705_vm5, %v1394_v15, 0.0 }
 0x279   :  { %713 = vadd.xlane.f32.xlu0 %v712_v16 }
 0x27b   :  { %v1396_v17 = vpop.eup %1395 }
 0x27c   :  { %725 = vrot.lane.b32.xlu1 %v1396_v17, %s1434_s4 }
 0x286   :  { %v524_v18 = vpop.xlane.xlu1 %523 }
 0x287   :  { %v525_v19 = vsub.f32 %v518_v6, %v524_v18 }
 0x289   :  { %v526_v20 = vmul.f32 1.442695, %v525_v19 }
 0x28b   :  { %1397 = vpow2.f32 %v526_v20 }
 0x295   :  { %v1398_v21 = vpop.eup %1397 }
 0x296   :  { %v528_v22 = vsel %vm521_vm7, %v1398_v21, 0.0 }
 0x297   :  { %529 = vadd.xlane.f32.xlu0 %v528_v22 }
 0x2ee   :  { %v726_v23 = vpop.permute.xlu1 %725 }
 0x2ef   :  { %v728_v24 = vsel %vm705_vm5, %v726_v23, 0.0 }
 0x2f0   :  { %729 = vadd.xlane.f32.xlu0 %v728_v24 }
 0x306   :  { %v714_v25 = vpop.xlane.xlu0 %713 }
 0x307   :  { %1399 = vrcp.f32 %v714_v25  ;;  %v1436_v25 = vmov 1934713408  }
 0x308   :  { %v845_v26 = vunpack.c.l.s4 %v1436_v25 }
 0x311   :  { %v1400_v30 = vpop.eup %1399 }
 0x312   :  { %v716_v31 = vmul.f32 %v1400_v30, %v1394_v15 }
 0x314   :  { %v743_v32 = vrot.slane %v716_v31, %v742_v28  ;;  %v736_v33 = vrot.slane %v716_v31, %v735_v29 }
 0x316   :  { %745 = vbcast.lane.b32.xlu1 %v743_v32, 256  ;;  %738 = vbcast.lane.b32.xlu0 %v736_v33, 256 }
 0x324   :  { %v530_v34 = vpop.xlane.xlu0 %529 }
 0x325   :  { %1401 = vrcp.f32 %v530_v34 }
 0x32f   :  { %v1402_v36 = vpop.eup %1401 }
 0x330   :  { %v532_v37 = vmul.f32 %v1402_v36, %v1398_v21  ;;  %v846_v36 = vunpack.c.0.s8 %v845_v26 }
 0x332   :  { %v534_v38 = vcombine.high %v532_v37, %v532_v37 }
 0x37d   :  { %v730_v35 = vpop.xlane.xlu0 %729 }
 0x37e   :  { %1403 = vrcp.f32 %v730_v35 }
 0x388   :  { %v1404_v39 = vpop.eup %1403  ;;  %v739_v40 = vpop.permute.xlu0 %738 }
 0x389   :  { %v746_v41 = vpop.permute.xlu1 %745  ;;  %v747_v42 = vmul.f32 %v739_v40, %v532_v37  ;;  %v732_v44 = vmul.f32 %v1404_v39, %v1396_v17  ;;  %v1435_v17 = vmov 1983009808  }
 0x38a   :  { %v748_v43 = vmul.f32 %v746_v41, %v534_v38  ;;  %v814_v18 = vunpack.c.l.s4 %v1435_v17 }
 0x38b   :  { %v750_v45 = vsel %vm749_vm8, %v747_v42, 0.0  ;;  %v767_v47 = vrot.slane %v732_v44, %v735_v29  ;;  %v775_v53 = vrot.slane %v732_v44, %v742_v28  ;;  %v946_v28 = vld [vmem:[%s1968_s10 + $0x20] sm:$0xff]  ;;  %v947_v29 = vld [vmem:[%s1968_s10 + $0x28] sm:$0xff] }
 0x38c   :  { %v757_v46 = vsel %vm749_vm8, %v748_v43, 0.0  ;;  %v751_v48 = vrot.slane %v750_v45, 4  ;;  %v815_v24 = vunpack.c.0.s8 %v814_v18  ;;  %v1366_v32 = vpack.c.bf16 %v947_v29, %v946_v28 }
 0x38d   :  { %v758_v50 = vrot.slane %v757_v46, 4  ;;  %770 = vbcast.lane.b32.xlu1 %v767_v47, 260  ;;  %v951_v47 = vld [vmem:[%s1968_s10 + $0x48] sm:$0xff] }
 0x38e   :  { %v752_v51 = vadd.f32 %v751_v48, %v750_v45  ;;  %v818_v34 = vsub.s32 %v815_v24, %v1882_v27  ;;  %1367 = vmatpush3.bf16.msra.mxu1 %v1366_v32  ;;  %v849_v45 = vsub.s32 %v846_v36, %v1882_v27 }
 0x38f   :  { %v759_v52 = vadd.f32 %v758_v50, %v757_v46  ;;  %1368 = vmatprep.subr.bf16.mxu1 %v1431_v49  ;;  %v950_v46 = vld [vmem:[%s1968_s10 + $0x40] sm:$0xff] }
 0x390   :  { %v753_v54 = vrot.slane %v752_v51, 2 }
 0x391   :  { %v760_v56 = vrot.slane %v759_v52, 2  ;;  %778 = vbcast.lane.b32.xlu1 %v775_v53, 260  ;;  %v1372_v53 = vpack.c.bf16 %v951_v47, %v950_v46 }
 0x392   :  { %v754_v57 = vadd.f32 %v753_v54, %v752_v51 }
 0x393   :  { %v761_v58 = vadd.f32 %v760_v56, %v759_v52 }
 0x394   :  { %v755_v59 = vrot.slane %v754_v57, 1 }
 0x395   :  { %v762_v60 = vrot.slane %v761_v58, 1 }
 0x396   :  { %v756_v61 = vadd.f32 %v755_v59, %v754_v57  ;;  %v953_v59 = vld [vmem:[%s1968_s10 + $0x58] sm:$0xff] }
 0x397   :  { %v763_v62 = vadd.f32 %v762_v60, %v761_v58  ;;  %v952_v58 = vld [vmem:[%s1968_s10 + $0x50] sm:$0xff] }
 0x398   :  { %797 = vbcast.lane.b32.xlu1 %v756_v61, 256 }
 0x399   :  { %808 = vbcast.lane.b32.xlu0 %v763_v62, 264 }
 0x39c   :  { %804 = vbcast.lane.b32.xlu1 %v763_v62, 256  ;;  %v1375_v62 = vpack.c.bf16 %v953_v59, %v952_v58 }
 0x3a0   :  { %801 = vbcast.lane.b32.xlu1 %v756_v61, 264 }
 0x3ff   :  { %v771_v5 = vpop.permute.xlu1 %770 }
 0x400   :  { %v780_v6 = vmul.f32 %v771_v5, %v532_v37  ;;  %v948_v37 = vld [vmem:[%s1968_s10 + $0x30] sm:$0xff] }
 0x402   :  { %v782_v7 = vsel %vm749_vm8, %v780_v6, 0.0 }
 0x403   :  { %v783_v8 = vrot.slane %v782_v7, 4  ;;  %v779_v9 = vpop.permute.xlu1 %778 }
 0x404   :  { %v781_v10 = vmul.f32 %v779_v9, %v534_v38  ;;  %v949_v38 = vld [vmem:[%s1968_s10 + $0x38] sm:$0xff]  ;;  %s1445_s10 = smov 90  }
 0x405   :  { %v784_v11 = vadd.f32 %v783_v8, %v782_v7  ;;  %v1369_v41 = vpack.c.bf16 %v949_v38, %v948_v37 }
 0x406   :  { %v789_v12 = vsel %vm749_vm8, %v781_v10, 0.0 }
 0x407   :  { %v785_v13 = vrot.slane %v784_v11, 2  ;;  %v790_v14 = vrot.slane %v789_v12, 4  ;;  %1370 = vmatpush3.bf16.msra.mxu1 %v1369_v41 }
 0x408   :  { %1371 = vmatprep.subr.bf16.mxu1 %v1431_v49 }
 0x409   :  { %v791_v15 = vadd.f32 %v790_v14, %v789_v12  ;;  %v786_v16 = vadd.f32 %v785_v13, %v784_v11 }
 0x40a   :  { %v798_v21 = vpop.permute.xlu1 %797 }
 0x40b   :  { %v792_v19 = vrot.slane %v791_v15, 2  ;;  %v787_v20 = vrot.slane %v786_v16, 1  ;;  %1373 = vmatpush3.bf16.msra.mxu1 %v1372_v53  ;;  %v809_v61 = vpop.permute.xlu0 %808 }
 0x40c   :  { %1374 = vmatprep.subr.bf16.mxu1 %v1431_v49 }
 0x40d   :  { %v793_v22 = vadd.f32 %v792_v19, %v791_v15  ;;  %v788_v23 = vadd.f32 %v787_v20, %v786_v16 }
 0x40e   :  { %v805_v35 = vpop.permute.xlu1 %804 }
 0x40f   :  { %v794_v30 = vrot.slane %v793_v22, 1  ;;  %v810_v31 = vmul.f32 %v798_v21, %v788_v23  ;;  %1376 = vmatpush3.bf16.msra.mxu1 %v1375_v62 }
 0x410   :  { %1246 = vmatprep.subr.mxu1 %v1433_v55 }
 0x411   :  { %v795_v33 = vadd.f32 %v794_v30, %v793_v22  ;;  %v812_v39 = vcombine.high %v810_v31, %v1433_v55  ;;  %v819_v42 = vrot.slane %v810_v31, %v818_v34 }
 0x412   :  { %v802_v27 = vpop.permute.xlu1 %801 }
 0x413   :  { %v811_v40 = vmul.f32 %v805_v35, %v795_v33  ;;  %v826_v48 = vrot.slane %v812_v39, %v818_v34  ;;  %v879_v63 = vmul.f32 %v809_v61, %v795_v33  ;;  %v878_v0 = vmul.f32 %v802_v27, %v788_v23  ;;  %1247 = vmatpush3.msk.msra.mxu1 %vm549_vm2, %v954_v4 }
 0x415   :  { %v827_v43 = vcombine.high %v811_v40, %v1433_v55  ;;  %v834_v44 = vrot.slane %v811_v40, %v818_v34  ;;  %v880_v5 = vcombine.low %v878_v0, %v879_v63 }
 0x417   :  { %v841_v50 = vrot.slane %v827_v43, %v818_v34  ;;  %v842_v51 = vcombine.low %v819_v42, %v834_v44  ;;  %v843_v52 = vcombine.high %v819_v42, %v834_v44  ;;  %v887_v7 = vrot.slane %v880_v5, %v849_v45 }
 0x419   :  { %v857_v54 = vrot.slane %v843_v52, %v849_v45  ;;  %v850_v56 = vrot.slane %v842_v51, %v849_v45  ;;  %v858_v57 = vcombine.low %v826_v48, %v841_v50  ;;  %v859_v2 = vcombine.high %v826_v48, %v841_v50 }
 0x41a   :  { %v888_v9 = vcombine.high %v887_v7, %v1433_v55 }
 0x41b   :  { %894 = vrot.lane.b32.xlu0 %v857_v54, %s1437_s2  ;;  %v874_v60 = vcombine.high %v850_v56, %v1433_v55  ;;  %v866_v1 = vrot.slane %v858_v57, %v849_v45  ;;  %v875_v3 = vcombine.high %v857_v54, %v1433_v55  ;;  %v873_v49 = vrot.slane %v859_v2, %v849_v45 }
 0x41d   :  { %890 = vrot.lane.b32.xlu1 %v874_v60, %s1438_s3  ;;  %v876_v6 = vcombine.high %v866_v1, %v1433_v55  ;;  %v877_v8 = vcombine.high %v873_v49, %v1433_v55 }
 0x41f   :  { %902 = vrot.lane.b32.xlu0 %v866_v1, %s1439_s7 }
 0x421   :  { %898 = vrot.lane.b32.xlu1 %v875_v3, %s1440_s9 }
 0x423   :  { %910 = vrot.lane.b32.xlu0 %v873_v49, %s1441_s30 }
 0x425   :  { %906 = vrot.lane.b32.xlu1 %v876_v6, %s1442_s12 }
 0x427   :  { %918 = vrot.lane.b32.xlu0 %v887_v7, %s1443_s13 }
 0x429   :  { %914 = vrot.lane.b32.xlu1 %v877_v8, %s1444_s14 }
 0x42d   :  { %922 = vrot.lane.b32.xlu1 %v888_v9, %s1445_s10 }
 0x48d   :  { %v895_v10 = vpop.permute.xlu0 %894 }
 0x48f   :  { %v891_v11 = vpop.permute.xlu1 %890 }
 0x490   :  { %v925_v12 = vsel %vm521_vm7, %v850_v56, %v891_v11 }
 0x491   :  { %v903_v13 = vpop.permute.xlu0 %902  ;;  %v927_v14 = vsel %vm926_vm9, %v925_v12, %v895_v10 }
 0x493   :  { %v899_v15 = vpop.permute.xlu1 %898 }
 0x494   :  { %v929_v16 = vsel %vm928_vm10, %v927_v14, %v899_v15 }
 0x495   :  { %v931_v17 = vsel %vm930_vm11, %v929_v16, %v903_v13  ;;  %v911_v19 = vpop.permute.xlu0 %910 }
 0x497   :  { %v907_v18 = vpop.permute.xlu1 %906 }
 0x498   :  { %v933_v20 = vsel %vm932_vm12, %v931_v17, %v907_v18 }
 0x499   :  { %v935_v55 = vsel %vm934_vm13, %v933_v20, %v911_v19  ;;  %v919_v23 = vpop.permute.xlu0 %918 }
 0x49b   :  { %v915_v21 = vpop.permute.xlu1 %914 }
 0x49c   :  { %v937_v22 = vsel %vm936_vm14, %v935_v55, %v915_v21 }
 0x49d   :  { %v939_v24 = vsel %vm938_vm15, %v937_v22, %v919_v23 }
 0x49f   :  { %v923_v25 = vpop.permute.xlu1 %922 }
 0x4a0   :  { %v941_v26 = vsel %vm940_vm0, %v939_v24, %v923_v25 }
 0x4a1   :  { %1249 = vmatmul.mubr.msk.f32.vlgmr.msra.gmra.mrb[8].mxu1 %vm955_vm1, %v941_v26 }
 0x574   :  { %v1028_v28 = vpop.f32.mrb[8].mxu1 }
 0x575   :  { %v1029_v29 = vadd.f32 1e-10, %v1028_v28  ;;  %v1250_v30 = vpop.f32.mrb[9].mxu1 }
 0x577   :  { %1405 = vlog2.f32 %v1029_v29 }
 0x581   :  { %v1406_v31 = vpop.eup %1405 }
 0x582   :  { %v1033_v32 = vmul.f32 0.6931472, %v1406_v31 }
 0x584   :  { %1034 = vst [vmem:[#allocation2] sm:$0x3] %v1033_v32 }
 0x585   :  { %1418 = shalt.err (!%p1415_p4)
}
 0x586   :  { %s1419_s6 = scalar_lea.hbm %s1969_s11, 32 }
 0x587   :  { %p1420_p5 = scmp.ne.s32.totalorder %s1969_s11, %s1419_s6  ;;  %p1423_p6 = scmp.lt.u32.totalorder %s1419_s6, %s1969_s11 }
 0x589   :  { %p1425_p7 = pnand %p1423_p6, %p1420_p5 }
 0x58b   :  { %1428 = shalt.err (!%p1425_p7)
}
 0x58c   :  { %1044 = dma.vmem_to_hbm [thread:$0]  %s1042_s16, 32, %s1969_s11, [#allocation3]  }
 0x58d   :  { %1429 = dma.done.wait [#allocation3], 32  }
 0x58e   :  { %1430 = vsyncadd [#allocation3], 4294967264 }
 0x58f   :  { %1048 = vsyncpa [#allocation3], 1 }

</bundles_post_ra>
